<compile_context>
chip_gen: v7x
topology: tpu7x:2x2x1
jax: 0.10.0
libtpu: 0.0.40
codegen_flags: <defaults>
</compile_context>

<pallas_src>
import functools

import jax
import jax.numpy as jnp
import numpy as np
from jax.experimental import pallas as pl
from jax.experimental.pallas import tpu as pltpu

EPS = 1e-5


def warp_kernel(x_ref,        # (Cin, L)        raw input, batch fused into lanes (L = N*H*W)
                masks_ref,    # (K*K, L)        precomputed border masks (f32 0/1)
                w_ref,        # (2*Cout, K*K*8) fused conv + residual weight (bn folded)
                bias_ref,     # (Cout, L)       border-aware pre-ReLU bias map
                aff_ref,      # (Cout, 2)       cols: [scale_out, shift2]
                o_ref,        # (Cout, L)
                patches_ref,  # (K*K*8, L)      VMEM scratch: sublane-aligned im2col
                *, W, K, Cin, Cout):
    L = x_ref.shape[1]
    pad = (K - 1) // 2
    cpad = patches_ref.shape[0] // (K * K)            # 8-sublane group per tap

    # Pad rows of the scratch must read as exact zeros (their weight columns are
    # zero, but stale VMEM could hold NaN).  One dense zeroing store.
    patches_ref[...] = jnp.zeros_like(patches_ref)

    x = x_ref[...]                                    # (Cin, L) raw input

    # Sublane-aligned im2col: tap `idx` occupies rows [idx*8, idx*8+Cin).
    # Roll along the fused lane axis + precomputed border mask == zero padding;
    # the mask also kills any lane whose rolled source crosses a sample boundary.
    for idx in range(K * K):
        oy, ox = idx // K - pad, idx % K - pad
        s = oy * W + ox                               # flat lane shift of this tap
        t = x if s == 0 else pltpu.roll(x, shift=(-s) % L, axis=1)
        if oy != 0 or ox != 0:
            t = t * masks_ref[idx:idx + 1, :]         # (1, L) sublane-broadcast mul
        patches_ref[idx * cpad: idx * cpad + Cin, :] = t   # 8-aligned store

    # One fused MXU matmul:
    #   rows [0, Cout)       = 3x3 conv of bn_in(x)   (scale_in folded into weights)
    #   rows [Cout, 2*Cout)  = 1x1 residual conv of x (scale_out folded into weights)
    res = jnp.dot(w_ref[...], patches_ref[...],
                  preferred_element_type=jnp.float32)      # (2*Cout, L)

    # + border-aware bias (shift_in through the zero-padded conv, + b_conv), ReLU.
    a = jnp.maximum(res[:Cout] + bias_ref[...], 0.0)       # (Cout, L)

    # Residual add + bn_out affine (scale stays post-ReLU -- cannot fold through).
    scale_o = aff_ref[:, 0:1]                               # (Cout, 1)
    shift2 = aff_ref[:, 1:2]                                # scale_out*b_scale + shift_out
    o_ref[...] = (a * scale_o + res[Cout:] + shift2).astype(o_ref.dtype)


def warp_layer_forward(x_nchw, params, eps=EPS):
    """Pallas WarpLayer forward. x_nchw: (N, Cin, H, W) f32 -> (N, Cout, H, W)."""
    x = x_nchw.astype(jnp.float32)
    N, Cin, H, W = x.shape
    HW = H * W
    L = N * HW
    w_conv, b_conv = params["w_conv"], params["b_conv"]      # (Cout,Cin,K,K), (Cout,)
    Cout, _, K, _ = w_conv.shape
    pad = (K - 1) // 2
    assert K % 2 == 1 and pad < min(H, W), "roll+mask im2col needs pad < min(H, W)"
    CPAD = 8                                                 # sublane-aligned tap group

    # ---- eval-mode BN folding (plain JAX parameter glue, once per call) ------
    g_i, be_i, m_i, v_i = params["bn_in"]
    scale_in = g_i * jax.lax.rsqrt(v_i + eps)
    shift_in = be_i - m_i * scale_in
    g_o, be_o, m_o, v_o = params["bn_out"]
    scale_out = g_o * jax.lax.rsqrt(v_o + eps)
    shift_out = be_o - m_o * scale_out

    # ---- fused weight (2*Cout, K*K*8): conv rows on top (bn_in scale folded),
    #      residual 1x1 rows below (bn_out scale folded), sharing the center tap.
    w_conv_scaled = w_conv * scale_in[None, :, None, None]            # (Cout,Cin,K,K)
    w_pack = jnp.transpose(w_conv_scaled, (0, 2, 3, 1))               # (Cout,K,K,Cin)
    w_pack = jnp.pad(w_pack, ((0, 0), (0, 0), (0, 0), (0, CPAD - Cin)))
    w_big = jnp.zeros((2 * Cout, K * K * CPAD), jnp.float32)
    w_big = w_big.at[:Cout].set(w_pack.reshape(Cout, K * K * CPAD))
    center = (pad * K + pad) * CPAD                                   # raw-x tap group
    w_res = scale_out[:, None] * params["w_scale"][:, :, 0, 0]        # (Cout, Cin)
    w_big = w_big.at[Cout:, center:center + Cin].set(w_res)

    # ---- border-aware pre-ReLU bias map: conv(shift_in * ones, zero-pad) + b_conv
    shift_img = jnp.broadcast_to(shift_in[None, :, None, None], (1, Cin, H, W))
    bias_map = jax.lax.conv_general_dilated(
        shift_img, w_conv, (1, 1), ((pad, pad), (pad, pad)),
        dimension_numbers=("NCHW", "OIHW", "NCHW"))[0] + b_conv[:, None, None]
    bias_map = jnp.tile(bias_map.reshape(Cout, HW), (1, N))           # (Cout, L)

    # ---- post-ReLU per-channel affine -----------------------------------------
    shift2 = scale_out * params["b_scale"] + shift_out
    aff = jnp.stack([scale_out, shift2], axis=1)                      # (Cout, 2)

    # ---- border masks: trace-time numpy constants, tiled over the fused batch --
    ys = np.arange(H)[:, None]
    xs = np.arange(W)[None, :]
    m = np.zeros((K * K, H, W), np.float32)
    for idx in range(K * K):
        oy, ox = idx // K - pad, idx % K - pad
        m[idx] = ((ys + oy >= 0) & (ys + oy < H) & (xs + ox >= 0) & (xs + ox < W))
    masks = jnp.asarray(np.tile(m.reshape(K * K, HW), (1, N)))        # (K*K, L)

    # ---- batch fused into the lane axis: one kernel invocation, no grid --------
    x_fused = jnp.transpose(x, (1, 0, 2, 3)).reshape(Cin, L)          # (Cin, N*H*W)

    out_fused = pl.pallas_call(
        functools.partial(warp_kernel, W=W, K=K, Cin=Cin, Cout=Cout),
        out_shape=jax.ShapeDtypeStruct((Cout, L), jnp.float32),
        in_specs=[pl.BlockSpec(memory_space=pltpu.MemorySpace.VMEM)] * 5,
        out_specs=pl.BlockSpec(memory_space=pltpu.MemorySpace.VMEM),
        scratch_shapes=[pltpu.VMEM((K * K * CPAD, L), jnp.float32)],
    )(x_fused, masks, w_big, bias_map, aff)

    return out_fused.reshape(Cout, N, H, W).transpose(1, 0, 2, 3)


def warp_layer_ref(x, params, eps=EPS):
    """Pure-JAX reference (NCHW, matches PyTorch eval-mode semantics)."""
    def bn(t, p):
        g, b, m, v = p
        return ((t - m[None, :, None, None]) * jax.lax.rsqrt(v + eps)[None, :, None, None]
                * g[None, :, None, None] + b[None, :, None, None])

    h = bn(x, params["bn_in"])
    h = jax.lax.conv_general_dilated(h, params["w_conv"], (1, 1), ((1, 1), (1, 1)),
                                     dimension_numbers=("NCHW", "OIHW", "NCHW"))
    h = h + params["b_conv"][None, :, None, None]
    h = jnp.maximum(h, 0.0)
    xs = jax.lax.conv_general_dilated(x, params["w_scale"], (1, 1), ((0, 0), (0, 0)),
                                      dimension_numbers=("NCHW", "OIHW", "NCHW"))
    xs = xs + params["b_scale"][None, :, None, None]
    h = xs + h
    h = bn(h, params["bn_out"])
    return h


def make_params(key, cin, cout, k):
    ks = jax.random.split(key, 12)
    return {
        "w_conv": 0.1 * jax.random.normal(ks[0], (cout, cin, k, k), jnp.float32),
        "b_conv": 0.1 * jax.random.normal(ks[1], (cout,), jnp.float32),
        "w_scale": 0.1 * jax.random.normal(ks[2], (cout, cin, 1, 1), jnp.float32),
        "b_scale": 0.1 * jax.random.normal(ks[3], (cout,), jnp.float32),
        "bn_in": (
            1.0 + 0.1 * jax.random.normal(ks[4], (cin,), jnp.float32),     # gamma
            0.1 * jax.random.normal(ks[5], (cin,), jnp.float32),           # beta
            0.1 * jax.random.normal(ks[6], (cin,), jnp.float32),           # running_mean
            0.5 + jnp.abs(jax.random.normal(ks[7], (cin,), jnp.float32)),  # running_var
        ),
        "bn_out": (
            1.0 + 0.1 * jax.random.normal(ks[8], (cout,), jnp.float32),
            0.1 * jax.random.normal(ks[9], (cout,), jnp.float32),
            0.1 * jax.random.normal(ks[10], (cout,), jnp.float32),
            0.5 + jnp.abs(jax.random.normal(ks[11], (cout,), jnp.float32)),
        ),
    }


if __name__ == "__main__":
    N, Cin, Cout, H, W, K = 2, 4, 8, 16, 16, 3

    key = jax.random.PRNGKey(0)
    k_x, k_p = jax.random.split(key)
    x = jax.random.normal(k_x, (N, Cin, H, W), jnp.float32)
    params = make_params(k_p, Cin, Cout, K)

    out = warp_layer_forward(x, params)
    out = jax.block_until_ready(out)

    ref = warp_layer_ref(x, params)
    assert out.shape == (N, Cout, H, W)
    np.testing.assert_allclose(np.asarray(out), np.asarray(ref), rtol=1e-4, atol=1e-4)

    print("KERNEL_OK")
</pallas_src>

<mosaic_0001>
module attributes {stable_mosaic.version = 11 : i64} {
  func.func @warp_kernel(%arg0: memref<4x512xf32, #tpu.memory_space<vmem>>, %arg1: memref<9x512xf32, #tpu.memory_space<vmem>>, %arg2: memref<16x72xf32, #tpu.memory_space<vmem>>, %arg3: memref<8x512xf32, #tpu.memory_space<vmem>>, %arg4: memref<8x2xf32, #tpu.memory_space<vmem>>, %arg5: memref<8x512xf32, #tpu.memory_space<vmem>>, %arg6: memref<72x512xf32, #tpu.memory_space<vmem>>) attributes {dimension_semantics = [], scalar_prefetch = 0 : i64, scratch_operands = 1 : i64, tpu.core_type = #tpu.core_type<tc>} {
    %cst = arith.constant 0.000000e+00 : f32
    %0 = vector.broadcast %cst : f32 to vector<72x512xf32>
    %c0 = arith.constant 0 : index
    %c0_0 = arith.constant 0 : index
    %1 = vector.load %arg6[%c0, %c0_0] : memref<72x512xf32, #tpu.memory_space<vmem>>, vector<72x512xf32>
    tpu.vector_store %arg6[%c0, %c0_0], %0 {strides = array<i32>} : memref<72x512xf32, #tpu.memory_space<vmem>>, vector<72x512xf32>,
    %c0_1 = arith.constant 0 : index
    %c0_2 = arith.constant 0 : index
    %2 = vector.load %arg0[%c0_1, %c0_2] : memref<4x512xf32, #tpu.memory_space<vmem>>, vector<4x512xf32>
    %c17_i32 = arith.constant 17 : i32
    %3 = tpu.dynamic_rotate %2 by %c17_i32 dim 1 : vector<4x512xf32>, i32 -> vector<4x512xf32>
    %c0_3 = arith.constant 0 : index
    %c0_4 = arith.constant 0 : index
    %4 = vector.load %arg1[%c0_3, %c0_4] : memref<9x512xf32, #tpu.memory_space<vmem>>, vector<1x512xf32>
    %5 = vector.broadcast %4 : vector<1x512xf32> to vector<4x512xf32>
    %6 = arith.mulf %3, %5 : vector<4x512xf32>
    %c0_5 = arith.constant 0 : index
    %c0_6 = arith.constant 0 : index
    %7 = vector.load %arg6[%c0_5, %c0_6] : memref<72x512xf32, #tpu.memory_space<vmem>>, vector<4x512xf32>
    tpu.vector_store %arg6[%c0_5, %c0_6], %6 {strides = array<i32>} : memref<72x512xf32, #tpu.memory_space<vmem>>, vector<4x512xf32>,
    %c16_i32 = arith.constant 16 : i32
    %8 = tpu.dynamic_rotate %2 by %c16_i32 dim 1 : vector<4x512xf32>, i32 -> vector<4x512xf32>
    %c1 = arith.constant 1 : index
    %c0_7 = arith.constant 0 : index
    %9 = vector.load %arg1[%c1, %c0_7] : memref<9x512xf32, #tpu.memory_space<vmem>>, vector<1x512xf32>
    %10 = vector.broadcast %9 : vector<1x512xf32> to vector<4x512xf32>
    %11 = arith.mulf %8, %10 : vector<4x512xf32>
    %c8 = arith.constant 8 : index
    %c0_8 = arith.constant 0 : index
    %12 = vector.load %arg6[%c8, %c0_8] : memref<72x512xf32, #tpu.memory_space<vmem>>, vector<4x512xf32>
    tpu.vector_store %arg6[%c8, %c0_8], %11 {strides = array<i32>} : memref<72x512xf32, #tpu.memory_space<vmem>>, vector<4x512xf32>,
    %c15_i32 = arith.constant 15 : i32
    %13 = tpu.dynamic_rotate %2 by %c15_i32 dim 1 : vector<4x512xf32>, i32 -> vector<4x512xf32>
    %c2 = arith.constant 2 : index
    %c0_9 = arith.constant 0 : index
    %14 = vector.load %arg1[%c2, %c0_9] : memref<9x512xf32, #tpu.memory_space<vmem>>, vector<1x512xf32>
    %15 = vector.broadcast %14 : vector<1x512xf32> to vector<4x512xf32>
    %16 = arith.mulf %13, %15 : vector<4x512xf32>
    %c16 = arith.constant 16 : index
    %c0_10 = arith.constant 0 : index
    %17 = vector.load %arg6[%c16, %c0_10] : memref<72x512xf32, #tpu.memory_space<vmem>>, vector<4x512xf32>
    tpu.vector_store %arg6[%c16, %c0_10], %16 {strides = array<i32>} : memref<72x512xf32, #tpu.memory_space<vmem>>, vector<4x512xf32>,
    %c1_i32 = arith.constant 1 : i32
    %18 = tpu.dynamic_rotate %2 by %c1_i32 dim 1 : vector<4x512xf32>, i32 -> vector<4x512xf32>
    %c3 = arith.constant 3 : index
    %c0_11 = arith.constant 0 : index
    %19 = vector.load %arg1[%c3, %c0_11] : memref<9x512xf32, #tpu.memory_space<vmem>>, vector<1x512xf32>
    %20 = vector.broadcast %19 : vector<1x512xf32> to vector<4x512xf32>
    %21 = arith.mulf %18, %20 : vector<4x512xf32>
    %c24 = arith.constant 24 : index
    %c0_12 = arith.constant 0 : index
    %22 = vector.load %arg6[%c24, %c0_12] : memref<72x512xf32, #tpu.memory_space<vmem>>, vector<4x512xf32>
    tpu.vector_store %arg6[%c24, %c0_12], %21 {strides = array<i32>} : memref<72x512xf32, #tpu.memory_space<vmem>>, vector<4x512xf32>,
    %c32 = arith.constant 32 : index
    %c0_13 = arith.constant 0 : index
    %23 = vector.load %arg6[%c32, %c0_13] : memref<72x512xf32, #tpu.memory_space<vmem>>, vector<4x512xf32>
    tpu.vector_store %arg6[%c32, %c0_13], %2 {strides = array<i32>} : memref<72x512xf32, #tpu.memory_space<vmem>>, vector<4x512xf32>,
    %c511_i32 = arith.constant 511 : i32
    %24 = tpu.dynamic_rotate %2 by %c511_i32 dim 1 : vector<4x512xf32>, i32 -> vector<4x512xf32>
    %c5 = arith.constant 5 : index
    %c0_14 = arith.constant 0 : index
    %25 = vector.load %arg1[%c5, %c0_14] : memref<9x512xf32, #tpu.memory_space<vmem>>, vector<1x512xf32>
    %26 = vector.broadcast %25 : vector<1x512xf32> to vector<4x512xf32>
    %27 = arith.mulf %24, %26 : vector<4x512xf32>
    %c40 = arith.constant 40 : index
    %c0_15 = arith.constant 0 : index
    %28 = vector.load %arg6[%c40, %c0_15] : memref<72x512xf32, #tpu.memory_space<vmem>>, vector<4x512xf32>
    tpu.vector_store %arg6[%c40, %c0_15], %27 {strides = array<i32>} : memref<72x512xf32, #tpu.memory_space<vmem>>, vector<4x512xf32>,
    %c497_i32 = arith.constant 497 : i32
    %29 = tpu.dynamic_rotate %2 by %c497_i32 dim 1 : vector<4x512xf32>, i32 -> vector<4x512xf32>
    %c6 = arith.constant 6 : index
    %c0_16 = arith.constant 0 : index
    %30 = vector.load %arg1[%c6, %c0_16] : memref<9x512xf32, #tpu.memory_space<vmem>>, vector<1x512xf32>
    %31 = vector.broadcast %30 : vector<1x512xf32> to vector<4x512xf32>
    %32 = arith.mulf %29, %31 : vector<4x512xf32>
    %c48 = arith.constant 48 : index
    %c0_17 = arith.constant 0 : index
    %33 = vector.load %arg6[%c48, %c0_17] : memref<72x512xf32, #tpu.memory_space<vmem>>, vector<4x512xf32>
    tpu.vector_store %arg6[%c48, %c0_17], %32 {strides = array<i32>} : memref<72x512xf32, #tpu.memory_space<vmem>>, vector<4x512xf32>,
    %c496_i32 = arith.constant 496 : i32
    %34 = tpu.dynamic_rotate %2 by %c496_i32 dim 1 : vector<4x512xf32>, i32 -> vector<4x512xf32>
    %c7 = arith.constant 7 : index
    %c0_18 = arith.constant 0 : index
    %35 = vector.load %arg1[%c7, %c0_18] : memref<9x512xf32, #tpu.memory_space<vmem>>, vector<1x512xf32>
    %36 = vector.broadcast %35 : vector<1x512xf32> to vector<4x512xf32>
    %37 = arith.mulf %34, %36 : vector<4x512xf32>
    %c56 = arith.constant 56 : index
    %c0_19 = arith.constant 0 : index
    %38 = vector.load %arg6[%c56, %c0_19] : memref<72x512xf32, #tpu.memory_space<vmem>>, vector<4x512xf32>
    tpu.vector_store %arg6[%c56, %c0_19], %37 {strides = array<i32>} : memref<72x512xf32, #tpu.memory_space<vmem>>, vector<4x512xf32>,
    %c495_i32 = arith.constant 495 : i32
    %39 = tpu.dynamic_rotate %2 by %c495_i32 dim 1 : vector<4x512xf32>, i32 -> vector<4x512xf32>
    %c8_20 = arith.constant 8 : index
    %c0_21 = arith.constant 0 : index
    %40 = vector.load %arg1[%c8_20, %c0_21] : memref<9x512xf32, #tpu.memory_space<vmem>>, vector<1x512xf32>
    %41 = vector.broadcast %40 : vector<1x512xf32> to vector<4x512xf32>
    %42 = arith.mulf %39, %41 : vector<4x512xf32>
    %c64 = arith.constant 64 : index
    %c0_22 = arith.constant 0 : index
    %43 = vector.load %arg6[%c64, %c0_22] : memref<72x512xf32, #tpu.memory_space<vmem>>, vector<4x512xf32>
    tpu.vector_store %arg6[%c64, %c0_22], %42 {strides = array<i32>} : memref<72x512xf32, #tpu.memory_space<vmem>>, vector<4x512xf32>,
    %c0_23 = arith.constant 0 : index
    %c0_24 = arith.constant 0 : index
    %44 = vector.load %arg2[%c0_23, %c0_24] : memref<16x72xf32, #tpu.memory_space<vmem>>, vector<16x72xf32>
    %c0_25 = arith.constant 0 : index
    %c0_26 = arith.constant 0 : index
    %45 = vector.load %arg6[%c0_25, %c0_26] : memref<72x512xf32, #tpu.memory_space<vmem>>, vector<72x512xf32>
    %cst_27 = arith.constant dense<0.000000e+00> : vector<16x512xf32>
    %46 = tpu.matmul %44, %45, %cst_27 {dimension_numbers = #tpu.dot_dimension_numbers<[1], [0], [0], [1], [0, 0, 1, 1], [], []>} : vector<16x72xf32>, vector<72x512xf32>, vector<16x512xf32> -> vector<16x512xf32>
    %47 = vector.extract_strided_slice %46 {offsets = [0, 0], sizes = [8, 512], strides = [1, 1]} : vector<16x512xf32> to vector<8x512xf32>
    %c0_28 = arith.constant 0 : index
    %c0_29 = arith.constant 0 : index
    %48 = vector.load %arg3[%c0_28, %c0_29] : memref<8x512xf32, #tpu.memory_space<vmem>>, vector<8x512xf32>
    %49 = arith.addf %47, %48 : vector<8x512xf32>
    %cst_30 = arith.constant 0.000000e+00 : f32
    %50 = vector.broadcast %cst_30 : f32 to vector<8x512xf32>
    %51 = arith.maximumf %49, %50 : vector<8x512xf32>
    %c0_31 = arith.constant 0 : index
    %c0_32 = arith.constant 0 : index
    %52 = vector.load %arg4[%c0_31, %c0_32] : memref<8x2xf32, #tpu.memory_space<vmem>>, vector<8x1xf32>
    %c0_33 = arith.constant 0 : index
    %c1_34 = arith.constant 1 : index
    %53 = vector.load %arg4[%c0_33, %c1_34] : memref<8x2xf32, #tpu.memory_space<vmem>>, vector<8x1xf32>
    %54 = vector.broadcast %52 : vector<8x1xf32> to vector<8x512xf32>
    %55 = arith.mulf %51, %54 : vector<8x512xf32>
    %56 = vector.extract_strided_slice %46 {offsets = [8, 0], sizes = [8, 512], strides = [1, 1]} : vector<16x512xf32> to vector<8x512xf32>
    %57 = arith.addf %55, %56 : vector<8x512xf32>
    %58 = vector.broadcast %53 : vector<8x1xf32> to vector<8x512xf32>
    %59 = arith.addf %57, %58 : vector<8x512xf32>
    %c0_35 = arith.constant 0 : index
    %c0_36 = arith.constant 0 : index
    %60 = vector.load %arg5[%c0_35, %c0_36] : memref<8x512xf32, #tpu.memory_space<vmem>>, vector<8x512xf32>
    tpu.vector_store %arg5[%c0_35, %c0_36], %59 {strides = array<i32>} : memref<8x512xf32, #tpu.memory_space<vmem>>, vector<8x512xf32>,
    return
  }
}

</mosaic_0001>

<bundles_post_ra>
// kernel: tpu_custom_call.1
= control target key start
LH: loop header
LB: loop body
LE: loop exit
PB: predicated region body
PF: predicated region fallthrough
CT: control target
= control target key end

     0   :  { %10 = vsyncpa [#allocation4], 0  ;;  %s1122_s0 = inlined_call_operand.hbm [shape: f32[4,512], index: 0, kind: input, shape index: {}]   ;;  %s1123_s1 = inlined_call_operand.hbm [shape: f32[9,512], index: 1, kind: input, shape index: {}]   ;;  %s1124_s2 = inlined_call_operand.vmem [shape: f32[16,72], index: 2, kind: input, shape index: {}]   ;;  %s1125_s3 = inlined_call_operand.hbm [shape: f32[8,512], index: 3, kind: input, shape index: {}]   ;;  %s1126_s4 = inlined_call_operand.vmem [shape: f32[8,2], index: 4, kind: input, shape index: {}]   ;;  %s1127_s5 = inlined_call_operand.hbm [shape: f32[8,512], index: 5, kind: output, shape index: {}]  }
   0x1   :  { %11 = vsyncpa [#allocation7], 0 }
   0x2   :  { %12 = vsyncpa [#allocation5], 0  ;;  %s864_s18 = smov [#allocation6]   ;;  %s770_s22 = scalar_lea.hbm %s1123_s1, 1024 }
   0x3   :  { %s28_s19 = sshll.u32 %s864_s18, 4  ;;  %p771_p0 = scmp.ne.s32.totalorder %s1123_s1, %s770_s22  ;;  %s29_s19 = int_to_ptr.vmem [resolvable:$true] %s28_s19 }
   0x4   :  { %p774_p1 = scmp.lt.u32.totalorder %s770_s22, %s1123_s1 }
   0x6   :  { %p776_p2 = pnand %p774_p1, %p771_p0 }
   0x8   :  { %779 = shalt.err (!%p776_p2)
}
   0x9   :  { %s780_s27 = scalar_lea.vmem %s29_s19, 1024  ;;  %p785_p4 = scmp.lt.s32.totalorder %s29_s19, %s29_s19 }
   0xa   :  { %p781_p3 = scmp.ne.s32.totalorder %s29_s19, %s780_s27  ;;  %p786_p5 = scmp.lt.s32.totalorder %s780_s27, %s780_s27 }
   0xc   :  { %p787_p6 = por %p786_p5, %p785_p4 }
   0xe   :  { %p788_p7 = pnand %p787_p6, %p781_p3 }
  0x10   :  { %791 = shalt.err (!%p788_p7)
}
  0x11   :  { %s865_s28 = smov 512   ;;  %s866_s29 = smov 32  }
  0x12   :  { %34 = dma.hbm_to_vmem [thread:$0]  %s1123_s1, 1024, %s29_s19, [#allocation7], %s865_s28, %s865_s28, %s866_s29  }
  0x13   :  { %s867_s7 = smov [#allocation3]   ;;  %s868_s9 = smov [#allocation8]  }
  0x14   :  { %s19_s8 = sshll.u32 %s867_s7, 4  ;;  %s43_s10 = sshll.u32 %s868_s9, 4  ;;  %s20_s8 = int_to_ptr.vmem [resolvable:$true] %s19_s8  ;;  %s44_s10 = int_to_ptr.vmem [resolvable:$true] %s43_s10 }
  0x15   :  { %s792_s13 = scalar_lea.hbm %s1122_s0, 256 }
  0x16   :  { %p793_p8 = scmp.ne.s32.totalorder %s1122_s0, %s792_s13  ;;  %p796_p9 = scmp.lt.u32.totalorder %s792_s13, %s1122_s0 }
  0x18   :  { %p798_p10 = pnand %p796_p9, %p793_p8 }
  0x1a   :  { %801 = shalt.err (!%p798_p10)
}
  0x1b   :  { %s802_s1 = scalar_lea.vmem %s20_s8, 256  ;;  %p807_p12 = scmp.lt.s32.totalorder %s20_s8, %s20_s8 }
  0x1c   :  { %p803_p11 = scmp.ne.s32.totalorder %s20_s8, %s802_s1  ;;  %p808_p13 = scmp.lt.s32.totalorder %s802_s1, %s802_s1 }
  0x1e   :  { %p809_p0 = por %p808_p13, %p807_p12 }
  0x20   :  { %p810_p1 = pnand %p809_p0, %p803_p11 }
  0x22   :  { %813 = shalt.err (!%p810_p1)
}
  0x23   :  { %22 = dma.hbm_to_vmem [thread:$0]  %s1122_s0, 256, %s20_s8, [#allocation4]  }
  0x24   :  { %s814_s22 = scalar_lea.hbm %s1125_s3, 512 }
  0x25   :  { %p815_p2 = scmp.ne.s32.totalorder %s1125_s3, %s814_s22  ;;  %p818_p3 = scmp.lt.u32.totalorder %s814_s22, %s1125_s3 }
  0x27   :  { %p820_p4 = pnand %p818_p3, %p815_p2 }
  0x29   :  { %823 = shalt.err (!%p820_p4)
}
  0x2a   :  { %s824_s27 = scalar_lea.vmem %s44_s10, 512  ;;  %p829_p6 = scmp.lt.s32.totalorder %s44_s10, %s44_s10 }
  0x2b   :  { %p825_p5 = scmp.ne.s32.totalorder %s44_s10, %s824_s27  ;;  %p830_p7 = scmp.lt.s32.totalorder %s824_s27, %s824_s27 }
  0x2d   :  { %p831_p8 = por %p830_p7, %p829_p6 }
  0x2f   :  { %p832_p9 = pnand %p831_p8, %p825_p5 }
  0x31   :  { %835 = shalt.err (!%p832_p9)
}
  0x32   :  { %46 = dma.hbm_to_vmem [thread:$0]  %s1125_s3, 512, %s44_s10, [#allocation7]  }
  0x33   :  { %858 = dma.done.wait [#allocation4], 256  }
  0x34   :  { %859 = vsyncadd [#allocation4], 4294967040 }
  0x35   :  { %860 = dma.done.wait [#allocation7], 1536  }
  0x36   :  { %861 = vsyncadd [#allocation7], 4294965760  ;;  %v869_v0 = vmov 0.0   ;;  %v95_v1 = vld [vmem:[#allocation3 + $0x8] sm:$0xff]  ;;  %v94_v2 = vld [vmem:[#allocation3] sm:$0xff]  ;;  %s870_s3 = smov 17   ;;  %v110_v8 = vlaneseq }
  0x37   :  { %58 = vst [vmem:[#allocation2] sm:$0xff] %v869_v0  ;;  %61 = vst [vmem:[#allocation2 + $0x18] sm:$0xff] %v869_v0  ;;  %568 = vmatprep.mubr.f32.mxu0 %v869_v0  ;;  %645 = vmatprep.mubr.f32.mxu1 %v869_v0  ;;  %v99_v3 = vcombine.high %v95_v1, %v95_v1  ;;  %v98_v4 = vcombine.high %v94_v2, %v94_v2  ;;  %s871_s29 = smov 16   ;;  %s872_s30 = smov 15   ;;  %v670_v5 = vld [vmem:[%s1126_s4] sm:$0xff]  ;;  %v878_v6 = vmov 0  }
  0x38   :  { %59 = vst [vmem:[#allocation2 + $0x8] sm:$0xff] %v869_v0  ;;  %60 = vst [vmem:[#allocation2 + $0x10] sm:$0xff] %v869_v0  ;;  %106 = vrot.lane.b32.xlu1 %v95_v1, %s870_s3  ;;  %102 = vrot.lane.b32.xlu0 %v94_v2, %s870_s3  ;;  %s873_s6 = smov 1   ;;  %s874_s7 = smov 127   ;;  %v879_v7 = vmov 1   ;;  %v120_v9 = vshrl.u32 %v110_v8, 7 }
  0x39   :  { %62 = vst [vmem:[#allocation2 + $0x20] sm:$0xff] %v869_v0  ;;  %63 = vst [vmem:[#allocation2 + $0x28] sm:$0xff] %v869_v0  ;;  %s875_s8 = smov 113   ;;  %s876_s9 = smov 112   ;;  %765 = vset.pattern.permute.xlu0 %v878_v6  ;;  %766 = vset.pattern.permute.xlu1 %v879_v7  ;;  %v988_v10 = vand.u32 127, %v110_v8  ;;  %vm497_vm8 = vcmask 588800  }
  0x3a   :  { %64 = vst [vmem:[#allocation2 + $0x30] sm:$0xff] %v869_v0  ;;  %65 = vst [vmem:[#allocation2 + $0x38] sm:$0xff] %v869_v0  ;;  %s877_s10 = smov 111   ;;  %v990_v11 = vsub.s32 0, %v120_v9  ;;  %v992_v12 = vsub.s32 3, %v120_v9  ;;  %v994_v16 = vsub.s32 1, %v120_v9 }
  0x3b   :  { %66 = vst [vmem:[#allocation2 + $0x40] sm:$0xff] %v869_v0  ;;  %67 = vst [vmem:[#allocation2 + $0x48] sm:$0xff] %v869_v0  ;;  %v117_v13 = vld [vmem:[#allocation6] ss:$8 sm:$0xf]  ;;  %vm112_vm0 = vcmp.lt.s32.totalorder %v988_v10, 17 }
  0x3c   :  { %68 = vst [vmem:[#allocation2 + $0x50] sm:$0xff] %v869_v0  ;;  %69 = vst [vmem:[#allocation2 + $0x58] sm:$0xff] %v869_v0  ;;  %108 = vrot.lane.b32.xlu1 %v99_v3, %s870_s3  ;;  %147 = vrot.lane.b32.xlu0 %v94_v2, %s871_s29  ;;  %v122_v17 = vrot.slane %v117_v13, %v990_v11  ;;  %v134_v18 = vrot.slane %v117_v13, %v992_v12  ;;  %v161_v19 = vld [vmem:[#allocation6 + $0x1] ss:$8 sm:$0xf]  ;;  %v999_v20 = vsub.s32 2, %v120_v9 }
  0x3d   :  { %70 = vst [vmem:[#allocation2 + $0x60] sm:$0xff] %v869_v0  ;;  %71 = vst [vmem:[#allocation2 + $0x68] sm:$0xff] %v869_v0  ;;  %vm155_vm1 = vcmp.lt.s32.totalorder %v988_v10, 16  ;;  %v170_v25 = vrot.slane %v161_v19, %v994_v16  ;;  %v126_v28 = vrot.slane %v117_v13, %v994_v16  ;;  %v166_v32 = vrot.slane %v161_v19, %v990_v11  ;;  %v205_v41 = vld [vmem:[#allocation6 + $0x2] ss:$8 sm:$0xf] }
  0x3e   :  { %72 = vst [vmem:[#allocation2 + $0x70] sm:$0xff] %v869_v0  ;;  %73 = vst [vmem:[#allocation2 + $0x78] sm:$0xff] %v869_v0  ;;  %v130_v29 = vrot.slane %v117_v13, %v999_v20  ;;  %v174_v36 = vrot.slane %v161_v19, %v999_v20  ;;  %v178_v40 = vrot.slane %v161_v19, %v992_v12  ;;  %vm199_vm2 = vcmp.lt.s32.totalorder %v988_v10, 15  ;;  %v249_v60 = vld [vmem:[#allocation6 + $0x3] ss:$8 sm:$0xf] }
  0x3f   :  { %74 = vst [vmem:[#allocation2 + $0x80] sm:$0xff] %v869_v0  ;;  %75 = vst [vmem:[#allocation2 + $0x88] sm:$0xff] %v869_v0  ;;  %v214_v50 = vrot.slane %v205_v41, %v994_v16  ;;  %v210_v55 = vrot.slane %v205_v41, %v990_v11  ;;  %v218_v56 = vrot.slane %v205_v41, %v999_v20  ;;  %vm243_vm3 = vcmp.lt.s32.totalorder %v988_v10, 1 }
  0x40   :  { %76 = vst [vmem:[#allocation2 + $0x90] sm:$0xff] %v869_v0  ;;  %77 = vst [vmem:[#allocation2 + $0x98] sm:$0xff] %v869_v0  ;;  %149 = vrot.lane.b32.xlu1 %v98_v4, %s871_s29  ;;  %104 = vrot.lane.b32.xlu0 %v98_v4, %s870_s3  ;;  %v222_v57 = vrot.slane %v205_v41, %v992_v12  ;;  %vm291_vm4 = vcmp.lt.s32.totalorder %v988_v10, 127  ;;  %vm335_vm5 = vcmp.lt.s32.totalorder %v988_v10, 113  ;;  %vm379_vm6 = vcmp.lt.s32.totalorder %v988_v10, 112 }
  0x41   :  { %78 = vst [vmem:[#allocation2 + $0xa0] sm:$0xff] %v869_v0  ;;  %79 = vst [vmem:[#allocation2 + $0xa8] sm:$0xff] %v869_v0  ;;  %vm423_vm7 = vcmp.lt.s32.totalorder %v988_v10, 111  ;;  %v459_v10 = vld [vmem:[%s1124_s2] sm:$0xff] }
  0x42   :  { %80 = vst [vmem:[#allocation2 + $0xb0] sm:$0xff] %v869_v0  ;;  %81 = vst [vmem:[#allocation2 + $0xb8] sm:$0xff] %v869_v0 }
  0x43   :  { %82 = vst [vmem:[#allocation2 + $0xc0] sm:$0xff] %v869_v0  ;;  %83 = vst [vmem:[#allocation2 + $0xc8] sm:$0xff] %v869_v0 }
  0x44   :  { %84 = vst [vmem:[#allocation2 + $0xd0] sm:$0xff] %v869_v0  ;;  %85 = vst [vmem:[#allocation2 + $0xd8] sm:$0xff] %v869_v0  ;;  %153 = vrot.lane.b32.xlu1 %v99_v3, %s871_s29  ;;  %151 = vrot.lane.b32.xlu0 %v95_v1, %s871_s29 }
  0x45   :  { %86 = vst [vmem:[#allocation2 + $0xe0] sm:$0xff] %v869_v0  ;;  %87 = vst [vmem:[#allocation2 + $0xe8] sm:$0xff] %v869_v0 }
  0x46   :  { %88 = vst [vmem:[#allocation2 + $0xf0] sm:$0xff] %v869_v0  ;;  %89 = vst [vmem:[#allocation2 + $0xf8] sm:$0xff] %v869_v0 }
  0x47   :  { %90 = vst [vmem:[#allocation2 + $0x100] sm:$0xff] %v869_v0  ;;  %91 = vst [vmem:[#allocation2 + $0x108] sm:$0xff] %v869_v0 }
  0x48   :  { %92 = vst [vmem:[#allocation2 + $0x110] sm:$0xff] %v869_v0  ;;  %93 = vst [vmem:[#allocation2 + $0x118] sm:$0xff] %v869_v0  ;;  %193 = vrot.lane.b32.xlu1 %v98_v4, %s872_s30  ;;  %191 = vrot.lane.b32.xlu0 %v94_v2, %s872_s30 }
  0x49   :  { %279 = vst [vmem:[#allocation2 + $0x80] sm:$0xf] %v94_v2  ;;  %281 = vst [vmem:[#allocation2 + $0x90] sm:$0xf] %v95_v1 }
  0x4a   :  { %280 = vst [vmem:[#allocation2 + $0x88] sm:$0xf] %v98_v4  ;;  %282 = vst [vmem:[#allocation2 + $0x98] sm:$0xf] %v99_v3 }
  0x4c   :  { %197 = vrot.lane.b32.xlu1 %v99_v3, %s872_s30  ;;  %195 = vrot.lane.b32.xlu0 %v95_v1, %s872_s30 }
  0x50   :  { %237 = vrot.lane.b32.xlu1 %v98_v4, %s873_s6  ;;  %235 = vrot.lane.b32.xlu0 %v94_v2, %s873_s6 }
  0x54   :  { %241 = vrot.lane.b32.xlu1 %v99_v3, %s873_s6  ;;  %239 = vrot.lane.b32.xlu0 %v95_v1, %s873_s6 }
  0x58   :  { %285 = vrot.lane.b32.xlu1 %v98_v4, %s874_s7  ;;  %283 = vrot.lane.b32.xlu0 %v94_v2, %s874_s7 }
  0x5c   :  { %289 = vrot.lane.b32.xlu1 %v99_v3, %s874_s7  ;;  %287 = vrot.lane.b32.xlu0 %v95_v1, %s874_s7 }
  0x60   :  { %329 = vrot.lane.b32.xlu1 %v98_v4, %s875_s8  ;;  %327 = vrot.lane.b32.xlu0 %v94_v2, %s875_s8 }
  0x64   :  { %333 = vrot.lane.b32.xlu1 %v99_v3, %s875_s8  ;;  %331 = vrot.lane.b32.xlu0 %v95_v1, %s875_s8 }
  0x68   :  { %373 = vrot.lane.b32.xlu1 %v98_v4, %s876_s9  ;;  %371 = vrot.lane.b32.xlu0 %v94_v2, %s876_s9 }
  0x6c   :  { %377 = vrot.lane.b32.xlu1 %v99_v3, %s876_s9  ;;  %375 = vrot.lane.b32.xlu0 %v95_v1, %s876_s9 }
  0x70   :  { %417 = vrot.lane.b32.xlu1 %v98_v4, %s877_s10  ;;  %415 = vrot.lane.b32.xlu0 %v94_v2, %s877_s10 }
  0x74   :  { %421 = vrot.lane.b32.xlu1 %v99_v3, %s877_s10  ;;  %419 = vrot.lane.b32.xlu0 %v95_v1, %s877_s10 }
  0x78   :  { %673 = vperm.xlu0 %765, %v670_v5   ;;  %685 = vperm.xlu1 %766, %v670_v5  }
  0x7c   :  { %767 = vset.pattern.permute.xlu0 %v879_v7  ;;  %v258_v7 = vrot.slane %v249_v60, %v994_v16 }
  0xaa   :  { %v107_v14 = vpop.permute.xlu1 %106  ;;  %v103_v15 = vpop.permute.xlu0 %102 }
  0xae   :  { %v109_v21 = vpop.permute.xlu1 %108  ;;  %v148_v22 = vpop.permute.xlu0 %147 }
  0xaf   :  { %v113_v23 = vsel %vm112_vm0, %v107_v14, %v109_v21  ;;  %v116_v24 = vsel %vm112_vm0, %v109_v21, %v103_v15 }
  0xb0   :  { %v139_v26 = vmul.f32 %v122_v17, %v116_v24  ;;  %v142_v27 = vmul.f32 %v134_v18, %v113_v23 }
  0xb2   :  { %143 = vst [vmem:[#allocation2] sm:$0xf] %v139_v26  ;;  %146 = vst [vmem:[#allocation2 + $0x18] sm:$0xf] %v142_v27  ;;  %v150_v30 = vpop.permute.xlu1 %149  ;;  %v105_v31 = vpop.permute.xlu0 %104  ;;  %v262_v27 = vrot.slane %v249_v60, %v999_v20 }
  0xb3   :  { %v158_v33 = vsel %vm155_vm1, %v148_v22, %v150_v30  ;;  %v114_v34 = vsel %vm112_vm0, %v105_v31, %v107_v14  ;;  %v115_v35 = vsel %vm112_vm0, %v103_v15, %v105_v31 }
  0xb4   :  { %v184_v37 = vmul.f32 %v170_v25, %v158_v33  ;;  %v140_v38 = vmul.f32 %v126_v28, %v115_v35  ;;  %v141_v39 = vmul.f32 %v130_v29, %v114_v34  ;;  %v254_v25 = vrot.slane %v249_v60, %v990_v11  ;;  %v297_v29 = vld [vmem:[#allocation6 + $0x5] ss:$8 sm:$0xf] }
  0xb5   :  { %v266_v28 = vrot.slane %v249_v60, %v992_v12 }
  0xb6   :  { %188 = vst [vmem:[#allocation2 + $0x28] sm:$0xf] %v184_v37  ;;  %144 = vst [vmem:[#allocation2 + $0x8] sm:$0xf] %v140_v38  ;;  %v154_v42 = vpop.permute.xlu1 %153  ;;  %v152_v43 = vpop.permute.xlu0 %151  ;;  %v302_v38 = vrot.slane %v297_v29, %v990_v11 }
  0xb7   :  { %145 = vst [vmem:[#allocation2 + $0x10] sm:$0xf] %v141_v39  ;;  %v159_v44 = vsel %vm155_vm1, %v154_v42, %v148_v22  ;;  %v156_v45 = vsel %vm155_vm1, %v152_v43, %v154_v42  ;;  %v157_v46 = vsel %vm155_vm1, %v150_v30, %v152_v43  ;;  %v314_v43 = vrot.slane %v297_v29, %v992_v12 }
  0xb8   :  { %v183_v47 = vmul.f32 %v166_v32, %v159_v44  ;;  %v185_v48 = vmul.f32 %v174_v36, %v157_v46  ;;  %v186_v49 = vmul.f32 %v178_v40, %v156_v45  ;;  %v306_v44 = vrot.slane %v297_v29, %v994_v16 }
  0xb9   :  { %v461_v8 = vld [vmem:[#allocation2] sm:$0xff]  ;;  %v464_v9 = vld [vmem:[#allocation2 + $0x18] sm:$0xff]  ;;  %v310_v45 = vrot.slane %v297_v29, %v999_v20 }
  0xba   :  { %187 = vst [vmem:[#allocation2 + $0x20] sm:$0xf] %v183_v47  ;;  %189 = vst [vmem:[#allocation2 + $0x30] sm:$0xf] %v185_v48  ;;  %v194_v51 = vpop.permute.xlu1 %193  ;;  %v192_v52 = vpop.permute.xlu0 %191 }
  0xbb   :  { %190 = vst [vmem:[#allocation2 + $0x38] sm:$0xf] %v186_v49  ;;  %v202_v53 = vsel %vm199_vm2, %v192_v52, %v194_v51  ;;  %v341_v48 = vld [vmem:[#allocation6 + $0x6] ss:$8 sm:$0xf] }
  0xbc   :  { %v228_v54 = vmul.f32 %v214_v50, %v202_v53 }
  0xbd   :  { %v462_v58 = vld [vmem:[#allocation2 + $0x8] sm:$0xff] }
  0xbe   :  { %v466_v59 = vld [vmem:[#allocation2 + $0x28] sm:$0xff]  ;;  %232 = vst [vmem:[#allocation2 + $0x48] sm:$0xf] %v228_v54  ;;  %v198_v61 = vpop.permute.xlu1 %197  ;;  %v196_v62 = vpop.permute.xlu0 %195  ;;  %v463_v13 = vld [vmem:[#allocation2 + $0x10] sm:$0xff] }
  0xbf   :  { %v716_v63 = vpack.c.bf16 %v466_v59, %v462_v58  ;;  %v203_v1 = vsel %vm199_vm2, %v198_v61, %v192_v52  ;;  %v200_v2 = vsel %vm199_vm2, %v196_v62, %v198_v61  ;;  %v201_v3 = vsel %vm199_vm2, %v194_v51, %v196_v62 }
  0xc0   :  { %v227_v4 = vmul.f32 %v210_v55, %v203_v1  ;;  %v229_v5 = vmul.f32 %v218_v56, %v201_v3  ;;  %v230_v6 = vmul.f32 %v222_v57, %v200_v2  ;;  %v346_v58 = vrot.slane %v341_v48, %v990_v11 }
  0xc1   :  { %717 = vmatprep.subr.bf16.mxu0 %v716_v63  ;;  %v465_v14 = vld [vmem:[#allocation2 + $0x20] sm:$0xff]  ;;  %v467_v17 = vld [vmem:[#allocation2 + $0x30] sm:$0xff] }
  0xc2   :  { %v468_v15 = vld [vmem:[#allocation2 + $0x38] sm:$0xff]  ;;  %231 = vst [vmem:[#allocation2 + $0x40] sm:$0xf] %v227_v4  ;;  %233 = vst [vmem:[#allocation2 + $0x50] sm:$0xf] %v229_v5  ;;  %v238_v18 = vpop.permute.xlu1 %237  ;;  %v236_v19 = vpop.permute.xlu0 %235  ;;  %v718_v21 = vpack.c.bf16 %v465_v14, %v461_v8  ;;  %v734_v23 = vpack.c.bf16 %v467_v17, %v463_v13  ;;  %v358_v8 = vrot.slane %v341_v48, %v992_v12 }
  0xc3   :  { %234 = vst [vmem:[#allocation2 + $0x58] sm:$0xf] %v230_v6  ;;  %v732_v22 = vpack.c.bf16 %v468_v15, %v464_v9  ;;  %v246_v24 = vsel %vm243_vm3, %v236_v19, %v238_v18  ;;  %v350_v13 = vrot.slane %v341_v48, %v994_v16  ;;  %v354_v14 = vrot.slane %v341_v48, %v999_v20  ;;  %v385_v15 = vld [vmem:[#allocation6 + $0x7] ss:$8 sm:$0xf] }
  0xc4   :  { %v272_v26 = vmul.f32 %v258_v7, %v246_v24  ;;  %719 = vmatpush1.bf16.msra.mxu0 %v718_v21  ;;  %v480_v24 = vld [vmem:[#allocation2 + $0x98] sm:$0xff]  ;;  %v390_v29 = vrot.slane %v385_v15, %v990_v11 }
  0xc5   :  { %733 = vmatprep.subr.bf16.mxu1 %v732_v22  ;;  %v470_v46 = vld [vmem:[#allocation2 + $0x48] sm:$0xff] }
  0xc6   :  { %735 = vmatpush1.bf16.msra.mxu1 %v734_v23  ;;  %276 = vst [vmem:[#allocation2 + $0x68] sm:$0xf] %v272_v26  ;;  %v242_v30 = vpop.permute.xlu1 %241  ;;  %v240_v31 = vpop.permute.xlu0 %239  ;;  %v478_v23 = vld [vmem:[#allocation2 + $0x88] sm:$0xff] }
  0xc7   :  { %v247_v32 = vsel %vm243_vm3, %v242_v30, %v236_v19  ;;  %v244_v33 = vsel %vm243_vm3, %v240_v31, %v242_v30  ;;  %v245_v34 = vsel %vm243_vm3, %v238_v18, %v240_v31  ;;  %v477_v30 = vld [vmem:[#allocation2 + $0x80] sm:$0xff] }
  0xc8   :  { %v271_v35 = vmul.f32 %v254_v25, %v247_v32  ;;  %v273_v36 = vmul.f32 %v262_v27, %v245_v34  ;;  %v274_v37 = vmul.f32 %v266_v28, %v244_v33  ;;  %v479_v25 = vld [vmem:[#allocation2 + $0x90] sm:$0xff] }
  0xc9   :  { %v469_v59 = vld [vmem:[#allocation2 + $0x40] sm:$0xff]  ;;  %v471_v61 = vld [vmem:[#allocation2 + $0x50] sm:$0xff] }
  0xca   :  { %275 = vst [vmem:[#allocation2 + $0x60] sm:$0xf] %v271_v35  ;;  %277 = vst [vmem:[#allocation2 + $0x70] sm:$0xf] %v273_v36  ;;  %v286_v39 = vpop.permute.xlu1 %285  ;;  %v284_v40 = vpop.permute.xlu0 %283  ;;  %v472_v60 = vld [vmem:[#allocation2 + $0x58] sm:$0xff] }
  0xcb   :  { %278 = vst [vmem:[#allocation2 + $0x78] sm:$0xf] %v274_v37  ;;  %v294_v41 = vsel %vm291_vm4, %v284_v40, %v286_v39 }
  0xcc   :  { %v319_v42 = vmul.f32 %v302_v38, %v294_v41 }
  0xcd   :  { %v474_v47 = vld [vmem:[#allocation2 + $0x68] sm:$0xff] }
  0xce   :  { %323 = vst [vmem:[#allocation2 + $0xa0] sm:$0xf] %v319_v42  ;;  %v290_v49 = vpop.permute.xlu1 %289  ;;  %v288_v50 = vpop.permute.xlu0 %287  ;;  %v720_v51 = vpack.c.bf16 %v474_v47, %v470_v46  ;;  %v402_v42 = vrot.slane %v385_v15, %v992_v12  ;;  %v429_v46 = vld [vmem:[#allocation6 + $0x20] ss:$8 sm:$0xf] }
  0xcf   :  { %v295_v52 = vsel %vm291_vm4, %v290_v49, %v284_v40  ;;  %v292_v53 = vsel %vm291_vm4, %v288_v50, %v290_v49  ;;  %v293_v54 = vsel %vm291_vm4, %v286_v39, %v288_v50 }
  0xd0   :  { %v322_v55 = vmul.f32 %v314_v43, %v295_v52  ;;  %v320_v56 = vmul.f32 %v306_v44, %v293_v54  ;;  %v321_v57 = vmul.f32 %v310_v45, %v292_v53  ;;  %721 = vmatprep.subr.bf16.mxu0 %v720_v51  ;;  %v394_v44 = vrot.slane %v385_v15, %v994_v16 }
  0xd1   :  { %v473_v62 = vld [vmem:[#allocation2 + $0x60] sm:$0xff]  ;;  %v475_v1 = vld [vmem:[#allocation2 + $0x70] sm:$0xff]  ;;  %v398_v45 = vrot.slane %v385_v15, %v999_v20 }
  0xd2   :  { %v476_v63 = vld [vmem:[#allocation2 + $0x78] sm:$0xff]  ;;  %326 = vst [vmem:[#allocation2 + $0xb8] sm:$0xf] %v322_v55  ;;  %324 = vst [vmem:[#allocation2 + $0xa8] sm:$0xf] %v320_v56  ;;  %v330_v2 = vpop.permute.xlu1 %329  ;;  %v328_v3 = vpop.permute.xlu0 %327  ;;  %v722_v4 = vpack.c.bf16 %v473_v62, %v469_v59  ;;  %v738_v6 = vpack.c.bf16 %v475_v1, %v471_v61  ;;  %v434_v55 = vrot.slane %v429_v46, %v990_v11 }
  0xd3   :  { %325 = vst [vmem:[#allocation2 + $0xb0] sm:$0xf] %v321_v57  ;;  %v736_v5 = vpack.c.bf16 %v476_v63, %v472_v60  ;;  %v338_v7 = vsel %vm335_vm5, %v328_v3, %v330_v2  ;;  %v446_v60 = vrot.slane %v429_v46, %v992_v12  ;;  %v438_v61 = vrot.slane %v429_v46, %v994_v16 }
  0xd4   :  { %v363_v9 = vmul.f32 %v346_v58, %v338_v7  ;;  %723 = vmatpush1.bf16.msra.mxu0 %v722_v4  ;;  %v442_v62 = vrot.slane %v429_v46, %v999_v20 }
  0xd5   :  { %737 = vmatprep.subr.bf16.mxu1 %v736_v5  ;;  %v481_v31 = vld [vmem:[#allocation2 + $0xa0] sm:$0xff] }
  0xd6   :  { %739 = vmatpush1.bf16.msra.mxu1 %v738_v6  ;;  %367 = vst [vmem:[#allocation2 + $0xc0] sm:$0xf] %v363_v9  ;;  %v334_v17 = vpop.permute.xlu1 %333  ;;  %v332_v18 = vpop.permute.xlu0 %331  ;;  %v726_v41 = vpack.c.bf16 %v481_v31, %v477_v30 }
  0xd7   :  { %v339_v19 = vsel %vm335_vm5, %v334_v17, %v328_v3  ;;  %v336_v21 = vsel %vm335_vm5, %v332_v18, %v334_v17  ;;  %v337_v22 = vsel %vm335_vm5, %v330_v2, %v332_v18 }
  0xd8   :  { %v366_v26 = vmul.f32 %v358_v8, %v339_v19  ;;  %v364_v27 = vmul.f32 %v350_v13, %v337_v22  ;;  %v365_v28 = vmul.f32 %v354_v14, %v336_v21 }
  0xd9   :  { %v482_v32 = vld [vmem:[#allocation2 + $0xa8] sm:$0xff]  ;;  %v484_v33 = vld [vmem:[#allocation2 + $0xb8] sm:$0xff] }
  0xda   :  { %v483_v34 = vld [vmem:[#allocation2 + $0xb0] sm:$0xff]  ;;  %370 = vst [vmem:[#allocation2 + $0xd8] sm:$0xf] %v366_v26  ;;  %368 = vst [vmem:[#allocation2 + $0xc8] sm:$0xf] %v364_v27  ;;  %v374_v35 = vpop.permute.xlu1 %373  ;;  %v372_v36 = vpop.permute.xlu0 %371  ;;  %v724_v37 = vpack.c.bf16 %v482_v32, %v478_v23  ;;  %v740_v38 = vpack.c.bf16 %v484_v33, %v480_v24  ;;  %v660_v27 = vld [vmem:[#allocation8 + $0x10] sm:$0xff] }
  0xdb   :  { %369 = vst [vmem:[#allocation2 + $0xd0] sm:$0xf] %v365_v28  ;;  %v742_v39 = vpack.c.bf16 %v483_v34, %v479_v25  ;;  %v382_v40 = vsel %vm379_vm6, %v372_v36, %v374_v35  ;;  %v460_v25 = vld [vmem:[%s1124_s2 + $0x8] sm:$0xff]  ;;  %v658_v26 = vld [vmem:[#allocation8] sm:$0xff]  ;;  %v659_v28 = vld [vmem:[#allocation8 + $0x8] sm:$0xff]  ;;  %s880_s2 = smov [#allocation9]  }
  0xdc   :  { %v407_v43 = vmul.f32 %v390_v29, %v382_v40  ;;  %725 = vmatprep.subr.bf16.mxu0 %v724_v37  ;;  %741 = vmatprep.subr.bf16.mxu1 %v740_v38  ;;  %v661_v29 = vld [vmem:[#allocation8 + $0x18] sm:$0xff]  ;;  %s702_s16 = sshll.u32 %s880_s2, 4  ;;  %s703_s16 = int_to_ptr.vmem [resolvable:$true] %s702_s16 }
  0xdd   :  { %727 = vmatpush1.bf16.msra.mxu0 %v726_v41  ;;  %743 = vmatpush1.bf16.msra.mxu1 %v742_v39  ;;  %v485_v17 = vld [vmem:[#allocation2 + $0xc0] sm:$0xff]  ;;  %s836_s17 = scalar_lea.vmem %s703_s16, 512  ;;  %p841_p11 = scmp.lt.s32.totalorder %s703_s16, %s703_s16 }
  0xde   :  { %411 = vst [vmem:[#allocation2 + $0xe0] sm:$0xf] %v407_v43  ;;  %v378_v47 = vpop.permute.xlu1 %377  ;;  %v376_v48 = vpop.permute.xlu0 %375  ;;  %p837_p10 = scmp.ne.s32.totalorder %s703_s16, %s836_s17  ;;  %p842_p12 = scmp.lt.s32.totalorder %s836_s17, %s836_s17 }
  0xdf   :  { %v383_v49 = vsel %vm379_vm6, %v378_v47, %v372_v36  ;;  %v380_v50 = vsel %vm379_vm6, %v376_v48, %v378_v47  ;;  %v381_v51 = vsel %vm379_vm6, %v374_v35, %v376_v48 }
  0xe0   :  { %v410_v52 = vmul.f32 %v402_v42, %v383_v49  ;;  %v408_v53 = vmul.f32 %v394_v44, %v381_v51  ;;  %v409_v54 = vmul.f32 %v398_v45, %v380_v50  ;;  %p843_p13 = por %p842_p12, %p841_p11 }
  0xe1   :  { %v486_v4 = vld [vmem:[#allocation2 + $0xc8] sm:$0xff]  ;;  %v488_v7 = vld [vmem:[#allocation2 + $0xd8] sm:$0xff] }
  0xe2   :  { %414 = vst [vmem:[#allocation2 + $0xf8] sm:$0xf] %v410_v52  ;;  %412 = vst [vmem:[#allocation2 + $0xe8] sm:$0xf] %v408_v53  ;;  %v418_v56 = vpop.permute.xlu1 %417  ;;  %v416_v57 = vpop.permute.xlu0 %415  ;;  %v487_v8 = vld [vmem:[#allocation2 + $0xd0] sm:$0xff]  ;;  %p844_p0 = pnand %p843_p13, %p837_p10 }
  0xe3   :  { %413 = vst [vmem:[#allocation2 + $0xf0] sm:$0xf] %v409_v54  ;;  %v426_v58 = vsel %vm423_vm7, %v416_v57, %v418_v56 }
  0xe4   :  { %v451_v59 = vmul.f32 %v434_v55, %v426_v58 }
  0xe5   :  { %v489_v16 = vld [vmem:[#allocation2 + $0xe0] sm:$0xff] }
  0xe6   :  { %455 = vst [vmem:[#allocation2 + $0x100] sm:$0xf] %v451_v59  ;;  %v422_v63 = vpop.permute.xlu1 %421  ;;  %v420_v1 = vpop.permute.xlu0 %419  ;;  %v730_v19 = vpack.c.bf16 %v489_v16, %v485_v17 }
  0xe7   :  { %v427_v11 = vsel %vm423_vm7, %v422_v63, %v416_v57  ;;  %v424_v2 = vsel %vm423_vm7, %v420_v1, %v422_v63  ;;  %v425_v3 = vsel %vm423_vm7, %v418_v56, %v420_v1 }
  0xe8   :  { %v454_v5 = vmul.f32 %v446_v60, %v427_v11  ;;  %v452_v6 = vmul.f32 %v438_v61, %v425_v3  ;;  %v453_v12 = vmul.f32 %v442_v62, %v424_v2 }
  0xe9   :  { %v490_v20 = vld [vmem:[#allocation2 + $0xe8] sm:$0xff]  ;;  %v492_v9 = vld [vmem:[#allocation2 + $0xf8] sm:$0xff] }
  0xea   :  { %v491_v13 = vld [vmem:[#allocation2 + $0xf0] sm:$0xff]  ;;  %458 = vst [vmem:[#allocation2 + $0x118] sm:$0xf] %v454_v5  ;;  %456 = vst [vmem:[#allocation2 + $0x108] sm:$0xf] %v452_v6  ;;  %v728_v14 = vpack.c.bf16 %v490_v20, %v486_v4  ;;  %v744_v15 = vpack.c.bf16 %v492_v9, %v488_v7 }
  0xeb   :  { %457 = vst [vmem:[#allocation2 + $0x110] sm:$0xf] %v453_v12  ;;  %v746_v18 = vpack.c.bf16 %v491_v13, %v487_v8 }
  0xec   :  { %729 = vmatprep.subr.bf16.mxu0 %v728_v14  ;;  %745 = vmatprep.subr.bf16.mxu1 %v744_v15 }
  0xed   :  { %731 = vmatpush1.bf16.msra.mxu0 %v730_v19  ;;  %747 = vmatpush1.bf16.msra.mxu1 %v746_v18  ;;  %v493_v24 = vld [vmem:[#allocation2 + $0x100] sm:$0xff] }
  0xf1   :  { %v494_v21 = vld [vmem:[#allocation2 + $0x108] sm:$0xff]  ;;  %v496_v22 = vld [vmem:[#allocation2 + $0x118] sm:$0xff] }
  0xf2   :  { %v495_v23 = vld [vmem:[#allocation2 + $0x110] sm:$0xff]  ;;  %520 = vmatprep.subr.mxu0 %v494_v21  ;;  %597 = vmatprep.subr.mxu1 %v496_v22 }
  0xf3   :  { %521 = vmatpush1.msra.mxu0 %v493_v24  ;;  %598 = vmatpush1.msra.mxu1 %v495_v23 }
  0xf4   :  { %712 = vmatmul.mubr.msk.f32.vlgmr.msra.gmra.mrb[0].mxu0 %vm497_vm8, %v459_v10  ;;  %714 = vmatmul.mubr.msk.f32.vlgmr.msra.gmra.mrb[0].mxu1 %vm497_vm8, %v459_v10 }
  0xf5   :  { %574 = vmatprep.mubr.f32.mxu0 %v869_v0  ;;  %651 = vmatprep.mubr.f32.mxu1 %v869_v0 }
  0xf7   :  { %v674_v38 = vpop.permute.xlu0 %673  ;;  %v686_v50 = vpop.permute.xlu1 %685 }
  0xf8   :  { %713 = vmatmul.mubr.msk.f32.gmra.mrb[2].mxu0 %vm497_vm8, %v460_v25  ;;  %715 = vmatmul.mubr.msk.f32.gmra.mrb[2].mxu1 %vm497_vm8, %v460_v25 }
 0x1c7   :  { %v570_v30 = vpop.f32.mrb[0].mxu0  ;;  %v647_v31 = vpop.f32.mrb[0].mxu1 }
 0x1c8   :  { %v662_v32 = vadd.f32 %v658_v26, %v570_v30  ;;  %v664_v33 = vadd.f32 %v660_v27, %v647_v31  ;;  %v572_v34 = vpop.f32.mrb[1].mxu0  ;;  %v649_v35 = vpop.f32.mrb[1].mxu1 }
 0x1c9   :  { %v663_v36 = vadd.f32 %v659_v28, %v572_v34  ;;  %v665_v37 = vadd.f32 %v661_v29, %v649_v35 }
 0x1ca   :  { %v666_v0 = vmax.f32 %v662_v32, 0.0  ;;  %v668_v39 = vmax.f32 %v664_v33, 0.0 }
 0x1cb   :  { %v667_v40 = vmax.f32 %v663_v36, 0.0  ;;  %v669_v41 = vmax.f32 %v665_v37, 0.0  ;;  %v576_v42 = vpop.f32.mrb[2].mxu0  ;;  %v653_v43 = vpop.f32.mrb[2].mxu1 }
 0x1cc   :  { %v676_v44 = vmul.f32 %v674_v38, %v666_v0  ;;  %v678_v45 = vmul.f32 %v674_v38, %v668_v39  ;;  %v578_v46 = vpop.f32.mrb[3].mxu0  ;;  %v655_v47 = vpop.f32.mrb[3].mxu1 }
 0x1cd   :  { %v677_v48 = vmul.f32 %v674_v38, %v667_v40  ;;  %v679_v49 = vmul.f32 %v674_v38, %v669_v41 }
 0x1ce   :  { %v680_v51 = vadd.f32 %v676_v44, %v576_v42  ;;  %v682_v52 = vadd.f32 %v678_v45, %v653_v43 }
 0x1cf   :  { %v681_v53 = vadd.f32 %v677_v48, %v578_v46  ;;  %v683_v54 = vadd.f32 %v679_v49, %v655_v47 }
 0x1d0   :  { %v688_v55 = vadd.f32 %v686_v50, %v680_v51  ;;  %v690_v56 = vadd.f32 %v686_v50, %v682_v52 }
 0x1d1   :  { %v689_v57 = vadd.f32 %v686_v50, %v681_v53  ;;  %v691_v58 = vadd.f32 %v686_v50, %v683_v54 }
 0x1d2   :  { %692 = vst [vmem:[#allocation9] sm:$0xff] %v688_v55  ;;  %694 = vst [vmem:[#allocation9 + $0x10] sm:$0xff] %v690_v56 }
 0x1d3   :  { %693 = vst [vmem:[#allocation9 + $0x8] sm:$0xff] %v689_v57  ;;  %695 = vst [vmem:[#allocation9 + $0x18] sm:$0xff] %v691_v58 }
 0x1d4   :  { %847 = shalt.err (!%p844_p0)
}
 0x1d5   :  { %s848_s19 = scalar_lea.hbm %s1127_s5, 512 }
 0x1d6   :  { %p849_p1 = scmp.ne.s32.totalorder %s1127_s5, %s848_s19  ;;  %p852_p2 = scmp.lt.u32.totalorder %s848_s19, %s1127_s5 }
 0x1d8   :  { %p854_p3 = pnand %p852_p2, %p849_p1 }
 0x1da   :  { %857 = shalt.err (!%p854_p3)
}
 0x1db   :  { %705 = dma.vmem_to_hbm [thread:$0]  %s703_s16, 512, %s1127_s5, [#allocation5]  }
 0x1dc   :  { %862 = dma.done.wait [#allocation5], 512  }
 0x1dd   :  { %863 = vsyncadd [#allocation5], 4294966784 }
 0x1de   :  { %709 = vsyncpa [#allocation4], 1 }
 0x1df   :  { %710 = vsyncpa [#allocation7], 1 }
 0x1e0   :  { %711 = vsyncpa [#allocation5], 1 }

</bundles_post_ra>
